<compile_context>
chip_gen: v7x
topology: tpu7x:2x2x1
jax: 0.10.0
libtpu: 0.0.40
codegen_flags: <defaults>
</compile_context>

<pallas_src>
import functools

import jax
import jax.numpy as jnp
from jax.experimental import pallas as pl
from jax.experimental.pallas import tpu as pltpu

_VMEM_LIMIT = 48 * 1024 * 1024  # below v7x's 64 MiB physical VMEM


def _round_up(x, m):
    return ((x + m - 1) // m) * m


def _pad2(x, rows, cols):
    """Zero-pad a 2-D array up to (rows, cols)."""
    out = jnp.zeros((rows, cols), x.dtype)
    return out.at[: x.shape[0], : x.shape[1]].set(x)


# ---------------------------------------------------------------------------
# Fused whole-network kernel (small graphs): everything resident in VMEM.
# ---------------------------------------------------------------------------
def _fused_gcn_kernel(*refs, n_layers, assoc):
    a_ref, h_ref = refs[0], refs[1]
    o_ref = refs[-1]
    wb = refs[2:-1]  # w0, b0, w1, b1, ...

    a = a_ref[...]
    h = h_ref[...]
    for i in range(n_layers):
        w = wb[2 * i][...]
        b = wb[2 * i + 1][...]
        if assoc[i]:
            # Expanding layer: run the O(N^2) matmul at the (smaller) input width.
            out = jnp.dot(
                jnp.dot(a, h, preferred_element_type=jnp.float32),
                w,
                preferred_element_type=jnp.float32,
            )
        else:
            # Contracting layer: transform first, aggregate at the output width.
            out = jnp.dot(
                a,
                jnp.dot(h, w, preferred_element_type=jnp.float32),
                preferred_element_type=jnp.float32,
            )
        out = out + b
        if i < n_layers - 1:
            out = jnp.maximum(out, 0.0)
        h = out
    o_ref[...] = h.astype(o_ref.dtype)


def _gcn_fused(a_pad, h0_pad, ws_pad, bs_pad):
    n_layers = len(ws_pad)
    n_pad = a_pad.shape[0]
    fout_last = ws_pad[-1].shape[1]
    assoc = tuple(w.shape[0] <= w.shape[1] for w in ws_pad)
    kernel = functools.partial(_fused_gcn_kernel, n_layers=n_layers, assoc=assoc)

    args = [a_pad, h0_pad]
    for w, b in zip(ws_pad, bs_pad):
        args += [w, b]

    return pl.pallas_call(
        kernel,
        out_shape=jax.ShapeDtypeStruct((n_pad, fout_last), jnp.float32),
        compiler_params=pltpu.CompilerParams(vmem_limit_bytes=_VMEM_LIMIT),
    )(*args)


# ---------------------------------------------------------------------------
# Tiled per-layer kernel (scalable path).
#   Grid: (row tiles of A, K reduction tiles of A).
#   acc += A[i,k] @ H[k]   (f32 accumulator scratch, resident per row tile)
#   at the last k:  out = act(acc @ W + b)   (W and bias resident in VMEM)
# ---------------------------------------------------------------------------
def _tiled_layer_kernel(a_ref, h_ref, w_ref, b_ref, o_ref, acc_ref, *, apply_relu):
    k = pl.program_id(1)

    @pl.when(k == 0)
    def _():
        acc_ref[...] = jnp.zeros_like(acc_ref)

    acc_ref[...] += jnp.dot(
        a_ref[...], h_ref[...], preferred_element_type=jnp.float32
    )

    @pl.when(k == pl.num_programs(1) - 1)
    def _():
        out = jnp.dot(acc_ref[...], w_ref[...], preferred_element_type=jnp.float32)
        out = out + b_ref[...]
        if apply_relu:
            out = jnp.maximum(out, 0.0)
        o_ref[...] = out.astype(o_ref.dtype)


def _graph_conv_tiled(a_pad, h_pad, w_pad, b_pad, *, apply_relu, tm=128, tk=128):
    n_pad = a_pad.shape[0]
    fin = h_pad.shape[1]
    fout = w_pad.shape[1]
    grid = (n_pad // tm, n_pad // tk)
    kernel = functools.partial(_tiled_layer_kernel, apply_relu=apply_relu)

    return pl.pallas_call(
        kernel,
        out_shape=jax.ShapeDtypeStruct((n_pad, fout), jnp.float32),
        grid=grid,
        in_specs=[
            pl.BlockSpec((tm, tk), lambda i, k: (i, k)),      # A_hat tile
            pl.BlockSpec((tk, fin), lambda i, k: (k, 0)),     # H tile (streamed over k)
            pl.BlockSpec((fin, fout), lambda i, k: (0, 0)),   # W (resident)
            pl.BlockSpec((1, fout), lambda i, k: (0, 0)),     # bias (resident)
        ],
        out_specs=pl.BlockSpec((tm, fout), lambda i, k: (i, 0)),
        scratch_shapes=[pltpu.VMEM((tm, fin), jnp.float32)],
        compiler_params=pltpu.CompilerParams(
            dimension_semantics=("parallel", "arbitrary"),
            vmem_limit_bytes=_VMEM_LIMIT,
        ),
    )(a_pad, h_pad, w_pad, b_pad)


# ---------------------------------------------------------------------------
# Wrapper: fold the normalization, pad to lane-dense shapes, dispatch.
# ---------------------------------------------------------------------------
def gcn_forward(adj, norm, features, weights, biases, *, fuse=None, tm=128, tk=128):
    """Stack of GraphConv layers; ReLU on all but the last (matches GCN.__init__)."""
    N = features.shape[0]
    n_layers = len(weights)

    # Fold the symmetric normalization into the adjacency once:
    #   A_hat = diag(norm) @ A @ diag(norm)
    a_hat = (adj * norm * norm.T).astype(jnp.float32)
    # NOTE: on v6e/v7x, casting a_hat (and h) to bf16 here would halve A's HBM
    # traffic and double MXU rate; kept in f32 for exact reference comparison.

    n_pad = _round_up(N, 128)
    a_pad = _pad2(a_hat, n_pad, n_pad)

    fins = [_round_up(w.shape[0], 128) for w in weights]
    fouts = [_round_up(w.shape[1], 128) for w in weights]
    ws_pad = [
        _pad2(w.astype(jnp.float32), fi, fo)
        for w, fi, fo in zip(weights, fins, fouts)
    ]
    bs_pad = [
        _pad2(b.reshape(1, -1).astype(jnp.float32), 1, fo)
        for b, fo in zip(biases, fouts)
    ]
    h0 = _pad2(features.astype(jnp.float32), n_pad, fins[0])

    if fuse is None:
        # Fused path keeps A_hat and two H buffers resident in VMEM; only use
        # it when that clearly fits (leave plenty of headroom for v7x).
        fmax = max(fins + fouts)
        approx_bytes = 4 * (n_pad * n_pad + 2 * n_pad * fmax)
        fuse = approx_bytes <= 8 * 1024 * 1024

    if fuse:
        out_pad = _gcn_fused(a_pad, h0, ws_pad, bs_pad)
    else:
        h = h0
        for i, (w, b) in enumerate(zip(ws_pad, bs_pad)):
            h = _graph_conv_tiled(
                a_pad, h, w, b, apply_relu=(i < n_layers - 1), tm=tm, tk=tk
            )
        out_pad = h

    return out_pad[:N, : weights[-1].shape[1]]


# ---------------------------------------------------------------------------
# Pure-JAX reference (original un-folded formulation).
# ---------------------------------------------------------------------------
def _reference(adj, norm, features, weights, biases):
    h = features
    n = len(weights)
    for i, (w, b) in enumerate(zip(weights, biases)):
        out = (adj @ ((h * norm) @ w)) * norm + b
        h = jnp.maximum(out, 0.0) if i < n - 1 else out
    return h


def _make_inputs(key, N, n_infeat, n_hidden, n_classes, n_layers):
    k_adj, k_feat, *k_params = jax.random.split(key, 2 + 2 * (n_layers + 1))

    # Deterministic symmetric adjacency with self-loops (dense form of CSR adj).
    rand = jax.random.uniform(k_adj, (N, N))
    adj = (rand + rand.T > 1.3).astype(jnp.float32)
    adj = jnp.maximum(adj, jnp.eye(N, dtype=jnp.float32))

    deg = jnp.maximum(adj.sum(axis=1, keepdims=True), 1.0)
    norm = 1.0 / jnp.sqrt(deg)  # D^{-1/2}, shape (N, 1)

    features = jax.random.normal(k_feat, (N, n_infeat), dtype=jnp.float32)

    dims = (
        [(n_infeat, n_hidden)]
        + [(n_hidden, n_hidden)] * (n_layers - 1)
        + [(n_hidden, n_classes)]
    )
    weights, biases = [], []
    for li, (din, dout) in enumerate(dims):
        kw, kb = k_params[2 * li], k_params[2 * li + 1]
        weights.append(jax.random.normal(kw, (din, dout), dtype=jnp.float32) * 0.1)
        biases.append(jax.random.normal(kb, (dout,), dtype=jnp.float32) * 0.01)
    return adj, norm, features, weights, biases


if __name__ == "__main__":
    key = jax.random.PRNGKey(0)
    n_infeat, n_hidden, n_classes, n_layers = 8, 32, 4, 2  # -> 3 GraphConv layers

    # --- Small graph: fused single-pallas_call path ------------------------
    k_small, k_big = jax.random.split(key)
    adj, norm, feats, ws, bs = _make_inputs(
        k_small, 16, n_infeat, n_hidden, n_classes, n_layers
    )
    out = jax.block_until_ready(gcn_forward(adj, norm, feats, ws, bs))
    ref = _reference(adj, norm, feats, ws, bs)
    assert out.shape == (16, n_classes)
    assert jnp.allclose(out, ref, atol=1e-4, rtol=1e-3), "fused path mismatch"

    # --- Larger graph: tiled per-layer path (multi-tile grid) --------------
    adj2, norm2, feats2, ws2, bs2 = _make_inputs(
        k_big, 200, n_infeat, n_hidden, n_classes, n_layers
    )
    out2 = jax.block_until_ready(
        gcn_forward(adj2, norm2, feats2, ws2, bs2, fuse=False)
    )
    ref2 = _reference(adj2, norm2, feats2, ws2, bs2)
    assert out2.shape == (200, n_classes)
    assert jnp.allclose(out2, ref2, atol=1e-4, rtol=1e-3), "tiled path mismatch"

    print("KERNEL_OK")
</pallas_src>

<mosaic_0001>
module attributes {stable_mosaic.version = 11 : i64} {
  func.func @_fused_gcn_kernel(%arg0: memref<128x128xf32, #tpu.memory_space<vmem>>, %arg1: memref<128x128xf32, #tpu.memory_space<vmem>>, %arg2: memref<128x128xf32, #tpu.memory_space<vmem>>, %arg3: memref<1x128xf32, #tpu.memory_space<vmem>>, %arg4: memref<128x128xf32, #tpu.memory_space<vmem>>, %arg5: memref<1x128xf32, #tpu.memory_space<vmem>>, %arg6: memref<128x128xf32, #tpu.memory_space<vmem>>, %arg7: memref<1x128xf32, #tpu.memory_space<vmem>>, %arg8: memref<128x128xf32, #tpu.memory_space<vmem>>) attributes {dimension_semantics = [], scalar_prefetch = 0 : i64, scratch_operands = 0 : i64, tpu.core_type = #tpu.core_type<tc>} {
    %c0 = arith.constant 0 : index
    %c0_0 = arith.constant 0 : index
    %0 = vector.load %arg0[%c0, %c0_0] : memref<128x128xf32, #tpu.memory_space<vmem>>, vector<128x128xf32>
    %c0_1 = arith.constant 0 : index
    %c0_2 = arith.constant 0 : index
    %1 = vector.load %arg1[%c0_1, %c0_2] : memref<128x128xf32, #tpu.memory_space<vmem>>, vector<128x128xf32>
    %c0_3 = arith.constant 0 : index
    %c0_4 = arith.constant 0 : index
    %2 = vector.load %arg2[%c0_3, %c0_4] : memref<128x128xf32, #tpu.memory_space<vmem>>, vector<128x128xf32>
    %c0_5 = arith.constant 0 : index
    %c0_6 = arith.constant 0 : index
    %3 = vector.load %arg3[%c0_5, %c0_6] : memref<1x128xf32, #tpu.memory_space<vmem>>, vector<1x128xf32>
    %cst = arith.constant dense<0.000000e+00> : vector<128x128xf32>
    %4 = tpu.matmul %0, %1, %cst {dimension_numbers = #tpu.dot_dimension_numbers<[1], [0], [0], [1], [0, 0, 1, 1], [], []>} : vector<128x128xf32>, vector<128x128xf32>, vector<128x128xf32> -> vector<128x128xf32>
    %cst_7 = arith.constant dense<0.000000e+00> : vector<128x128xf32>
    %5 = tpu.matmul %4, %2, %cst_7 {dimension_numbers = #tpu.dot_dimension_numbers<[1], [0], [0], [1], [0, 0, 1, 1], [], []>} : vector<128x128xf32>, vector<128x128xf32>, vector<128x128xf32> -> vector<128x128xf32>
    %6 = vector.broadcast %3 : vector<1x128xf32> to vector<128x128xf32>
    %7 = arith.addf %5, %6 : vector<128x128xf32>
    %cst_8 = arith.constant 0.000000e+00 : f32
    %8 = vector.broadcast %cst_8 : f32 to vector<128x128xf32>
    %9 = arith.maximumf %7, %8 : vector<128x128xf32>
    %c0_9 = arith.constant 0 : index
    %c0_10 = arith.constant 0 : index
    %10 = vector.load %arg4[%c0_9, %c0_10] : memref<128x128xf32, #tpu.memory_space<vmem>>, vector<128x128xf32>
    %c0_11 = arith.constant 0 : index
    %c0_12 = arith.constant 0 : index
    %11 = vector.load %arg5[%c0_11, %c0_12] : memref<1x128xf32, #tpu.memory_space<vmem>>, vector<1x128xf32>
    %cst_13 = arith.constant dense<0.000000e+00> : vector<128x128xf32>
    %12 = tpu.matmul %0, %9, %cst_13 {dimension_numbers = #tpu.dot_dimension_numbers<[1], [0], [0], [1], [0, 0, 1, 1], [], []>} : vector<128x128xf32>, vector<128x128xf32>, vector<128x128xf32> -> vector<128x128xf32>
    %cst_14 = arith.constant dense<0.000000e+00> : vector<128x128xf32>
    %13 = tpu.matmul %12, %10, %cst_14 {dimension_numbers = #tpu.dot_dimension_numbers<[1], [0], [0], [1], [0, 0, 1, 1], [], []>} : vector<128x128xf32>, vector<128x128xf32>, vector<128x128xf32> -> vector<128x128xf32>
    %14 = vector.broadcast %11 : vector<1x128xf32> to vector<128x128xf32>
    %15 = arith.addf %13, %14 : vector<128x128xf32>
    %cst_15 = arith.constant 0.000000e+00 : f32
    %16 = vector.broadcast %cst_15 : f32 to vector<128x128xf32>
    %17 = arith.maximumf %15, %16 : vector<128x128xf32>
    %c0_16 = arith.constant 0 : index
    %c0_17 = arith.constant 0 : index
    %18 = vector.load %arg6[%c0_16, %c0_17] : memref<128x128xf32, #tpu.memory_space<vmem>>, vector<128x128xf32>
    %c0_18 = arith.constant 0 : index
    %c0_19 = arith.constant 0 : index
    %19 = vector.load %arg7[%c0_18, %c0_19] : memref<1x128xf32, #tpu.memory_space<vmem>>, vector<1x128xf32>
    %cst_20 = arith.constant dense<0.000000e+00> : vector<128x128xf32>
    %20 = tpu.matmul %0, %17, %cst_20 {dimension_numbers = #tpu.dot_dimension_numbers<[1], [0], [0], [1], [0, 0, 1, 1], [], []>} : vector<128x128xf32>, vector<128x128xf32>, vector<128x128xf32> -> vector<128x128xf32>
    %cst_21 = arith.constant dense<0.000000e+00> : vector<128x128xf32>
    %21 = tpu.matmul %20, %18, %cst_21 {dimension_numbers = #tpu.dot_dimension_numbers<[1], [0], [0], [1], [0, 0, 1, 1], [], []>} : vector<128x128xf32>, vector<128x128xf32>, vector<128x128xf32> -> vector<128x128xf32>
    %22 = vector.broadcast %19 : vector<1x128xf32> to vector<128x128xf32>
    %23 = arith.addf %21, %22 : vector<128x128xf32>
    %c0_22 = arith.constant 0 : index
    %c0_23 = arith.constant 0 : index
    %24 = vector.load %arg8[%c0_22, %c0_23] : memref<128x128xf32, #tpu.memory_space<vmem>>, vector<128x128xf32>
    tpu.vector_store %arg8[%c0_22, %c0_23], %23 {strides = array<i32>} : memref<128x128xf32, #tpu.memory_space<vmem>>, vector<128x128xf32>,
    return
  }
}

</mosaic_0001>

<bundles_post_ra>
// kernel: tpu_custom_call.1
= control target key start
LH: loop header
LB: loop body
LE: loop exit
PB: predicated region body
PF: predicated region fallthrough
CT: control target
= control target key end

     0   :  { %13 = vsyncpa [#allocation3], 0  ;;  %s2289_s0 = inlined_call_operand.hbm [shape: f32[128,128], index: 0, kind: input, shape index: {}]   ;;  %s2290_s1 = inlined_call_operand.hbm [shape: f32[128,128], index: 1, kind: input, shape index: {}]   ;;  %s2291_s2 = inlined_call_operand.hbm [shape: f32[128,128], index: 2, kind: input, shape index: {}]   ;;  %s2292_s3 = inlined_call_operand.vmem [shape: f32[1,128], index: 3, kind: input, shape index: {}]   ;;  %s2293_s4 = inlined_call_operand.hbm [shape: f32[128,128], index: 4, kind: input, shape index: {}]   ;;  %s2294_s5 = inlined_call_operand.vmem [shape: f32[1,128], index: 5, kind: input, shape index: {}]   ;;  %s2295_s6 = inlined_call_operand.hbm [shape: f32[128,128], index: 6, kind: input, shape index: {}]   ;;  %s2296_s7 = inlined_call_operand.vmem [shape: f32[1,128], index: 7, kind: input, shape index: {}]   ;;  %s2297_s8 = inlined_call_operand.hbm [shape: f32[128,128], index: 8, kind: output, shape index: {}]  }
   0x1   :  { %14 = vsyncpa [#allocation6], 0 }
   0x2   :  { %15 = vsyncpa [#allocation9], 0 }
   0x3   :  { %16 = vsyncpa [#allocation4], 0  ;;  %s2007_s27 = smov [#allocation5]   ;;  %s2008_s29 = smov [#allocation8]  }
   0x4   :  { %s34_s28 = sshll.u32 %s2007_s27, 4  ;;  %s60_s30 = sshll.u32 %s2008_s29, 4  ;;  %s35_s28 = int_to_ptr.vmem [resolvable:$true] %s34_s28  ;;  %s2060_s30 = int_to_ptr.vmem [resolvable:$true] %s60_s30 }
   0x5   :  { %s1867_s11 = scalar_lea.hbm %s2290_s1, 2048 }
   0x6   :  { %p1868_p0 = scmp.ne.s32.totalorder %s2290_s1, %s1867_s11  ;;  %p1871_p1 = scmp.lt.u32.totalorder %s1867_s11, %s2290_s1 }
   0x8   :  { %p1873_p2 = pnand %p1871_p1, %p1868_p0 }
   0xa   :  { %1876 = shalt.err (!%p1873_p2)
}
   0xb   :  { %s1877_s16 = scalar_lea.vmem %s35_s28, 2048  ;;  %p1882_p4 = scmp.lt.s32.totalorder %s35_s28, %s35_s28 }
   0xc   :  { %p1878_p3 = scmp.ne.s32.totalorder %s35_s28, %s1877_s16  ;;  %p1883_p5 = scmp.lt.s32.totalorder %s1877_s16, %s1877_s16 }
   0xe   :  { %p1884_p6 = por %p1883_p5, %p1882_p4 }
  0x10   :  { %p1885_p7 = pnand %p1884_p6, %p1878_p3 }
  0x12   :  { %1888 = shalt.err (!%p1885_p7)
}
  0x13   :  { %s2009_s17 = smov 128   ;;  %s2010_s18 = smov 8  }
  0x14   :  { %40 = dma.hbm_to_vmem [thread:$0]  %s2290_s1, 2048, %s35_s28, [#allocation6], %s2009_s17, %s2009_s17, %s2010_s18  }
  0x15   :  { %s1889_s23 = scalar_lea.hbm %s2293_s4, 2048 }
  0x16   :  { %p1890_p8 = scmp.ne.s32.totalorder %s2293_s4, %s1889_s23  ;;  %p1893_p9 = scmp.lt.u32.totalorder %s1889_s23, %s2293_s4 }
  0x18   :  { %p1895_p10 = pnand %p1893_p9, %p1890_p8 }
  0x1a   :  { %1898 = shalt.err (!%p1895_p10)
}
  0x1b   :  { %s1899_s29 = scalar_lea.vmem %s2060_s30, 2048  ;;  %p1904_p12 = scmp.lt.s32.totalorder %s2060_s30, %s2060_s30 }
  0x1c   :  { %p1900_p11 = scmp.ne.s32.totalorder %s2060_s30, %s1899_s29  ;;  %p1905_p13 = scmp.lt.s32.totalorder %s1899_s29, %s1899_s29 }
  0x1e   :  { %p1906_p0 = por %p1905_p13, %p1904_p12 }
  0x20   :  { %p1907_p1 = pnand %p1906_p0, %p1900_p11 }
  0x22   :  { %1910 = shalt.err (!%p1907_p1)
}
  0x23   :  { %66 = dma.hbm_to_vmem [thread:$0]  %s2293_s4, 2048, %s2060_s30, [#allocation9], %s2009_s17, %s2009_s17, %s2010_s18  }
  0x24   :  { %s2011_s9 = smov [#allocation2]   ;;  %s2012_s11 = smov [#allocation7]  }
  0x25   :  { %s22_s10 = sshll.u32 %s2011_s9, 4  ;;  %s46_s12 = sshll.u32 %s2012_s11, 4  ;;  %s23_s10 = int_to_ptr.vmem [resolvable:$true] %s22_s10  ;;  %s2097_s12 = int_to_ptr.vmem [resolvable:$true] %s46_s12 }
  0x26   :  { %s1911_s15 = scalar_lea.hbm %s2289_s0, 2048 }
  0x27   :  { %p1912_p2 = scmp.ne.s32.totalorder %s2289_s0, %s1911_s15  ;;  %p1915_p3 = scmp.lt.u32.totalorder %s1911_s15, %s2289_s0 }
  0x29   :  { %p1917_p4 = pnand %p1915_p3, %p1912_p2 }
  0x2b   :  { %1920 = shalt.err (!%p1917_p4)
}
  0x2c   :  { %s1921_s4 = scalar_lea.vmem %s23_s10, 2048  ;;  %p1926_p6 = scmp.lt.s32.totalorder %s23_s10, %s23_s10 }
  0x2d   :  { %p1922_p5 = scmp.ne.s32.totalorder %s23_s10, %s1921_s4  ;;  %p1927_p7 = scmp.lt.s32.totalorder %s1921_s4, %s1921_s4 }
  0x2f   :  { %p1928_p8 = por %p1927_p7, %p1926_p6 }
  0x31   :  { %p1929_p9 = pnand %p1928_p8, %p1922_p5 }
  0x33   :  { %1932 = shalt.err (!%p1929_p9)
}
  0x34   :  { %28 = dma.hbm_to_vmem [thread:$0]  %s2289_s0, 2048, %s23_s10, [#allocation3], %s2009_s17, %s2009_s17, %s2010_s18  }
  0x35   :  { %s1933_s25 = scalar_lea.hbm %s2291_s2, 2048 }
  0x36   :  { %p1934_p10 = scmp.ne.s32.totalorder %s2291_s2, %s1933_s25  ;;  %p1937_p11 = scmp.lt.u32.totalorder %s1933_s25, %s2291_s2 }
  0x38   :  { %p1939_p12 = pnand %p1937_p11, %p1934_p10 }
  0x3a   :  { %1942 = shalt.err (!%p1939_p12)
}
  0x3b   :  { %s1943_s28 = scalar_lea.vmem %s2097_s12, 2048  ;;  %p1948_p0 = scmp.lt.s32.totalorder %s2097_s12, %s2097_s12 }
  0x3c   :  { %p1944_p13 = scmp.ne.s32.totalorder %s2097_s12, %s1943_s28  ;;  %p1949_p1 = scmp.lt.s32.totalorder %s1943_s28, %s1943_s28 }
  0x3e   :  { %p1950_p2 = por %p1949_p1, %p1948_p0 }
  0x40   :  { %p1951_p3 = pnand %p1950_p2, %p1944_p13 }
  0x42   :  { %1954 = shalt.err (!%p1951_p3)
}
  0x43   :  { %52 = dma.hbm_to_vmem [thread:$0]  %s2291_s2, 2048, %s2097_s12, [#allocation6], %s2009_s17, %s2009_s17, %s2010_s18  }
  0x44   :  { %s2013_s10 = smov [#allocation10]   ;;  %s1955_s15 = scalar_lea.hbm %s2295_s6, 2048 }
  0x45   :  { %s74_s11 = sshll.u32 %s2013_s10, 4  ;;  %p1956_p4 = scmp.ne.s32.totalorder %s2295_s6, %s1955_s15  ;;  %s75_s11 = int_to_ptr.vmem [resolvable:$true] %s74_s11 }
  0x46   :  { %p1959_p5 = scmp.lt.u32.totalorder %s1955_s15, %s2295_s6 }
  0x48   :  { %p1961_p6 = pnand %p1959_p5, %p1956_p4 }
  0x4a   :  { %1964 = shalt.err (!%p1961_p6)
}
  0x4b   :  { %s1965_s4 = scalar_lea.vmem %s75_s11, 2048  ;;  %p1970_p8 = scmp.lt.s32.totalorder %s75_s11, %s75_s11 }
  0x4c   :  { %p1966_p7 = scmp.ne.s32.totalorder %s75_s11, %s1965_s4  ;;  %p1971_p9 = scmp.lt.s32.totalorder %s1965_s4, %s1965_s4 }
  0x4e   :  { %p1972_p10 = por %p1971_p9, %p1970_p8 }
  0x50   :  { %p1973_p11 = pnand %p1972_p10, %p1966_p7 }
  0x52   :  { %1976 = shalt.err (!%p1973_p11)
}
  0x53   :  { %80 = dma.hbm_to_vmem [thread:$0]  %s2295_s6, 2048, %s75_s11, [#allocation9], %s2009_s17, %s2009_s17, %s2010_s18  }
  0x54   :  { %1999 = dma.done.wait [#allocation3], 2048  }
  0x55   :  { %2000 = vsyncadd [#allocation3], 4294965248 }
  0x56   :  { %2001 = dma.done.wait [#allocation6], 4096  }
  0x57   :  { %2002 = vsyncadd [#allocation6], 4294963200 }
  0x58   :  { %2003 = dma.done.wait [#allocation9], 4096  }
  0x59   :  { %2004 = vsyncadd [#allocation9], 4294963200  ;;  %v114_v0 = vld [vmem:[#allocation5] sm:$0xff]  ;;  %v115_v1 = vld [vmem:[#allocation5 + $0x8] sm:$0xff] }
  0x5a   :  { %v116_v2 = vld [vmem:[#allocation5 + $0x10] sm:$0xff]  ;;  %v1667_v3 = vpack.c.bf16 %v115_v1, %v114_v0  ;;  %v117_v4 = vld [vmem:[#allocation5 + $0x18] sm:$0xff]  ;;  %v118_v6 = vld [vmem:[#allocation5 + $0x20] sm:$0xff] }
  0x5b   :  { %v1671_v5 = vpack.c.bf16 %v117_v4, %v116_v2  ;;  %v119_v7 = vld [vmem:[#allocation5 + $0x28] sm:$0xff]  ;;  %v2149_v9 = vld [vmem:[#allocation2] sm:$0xff]  ;;  %v120_v10 = vld [vmem:[#allocation5 + $0x30] sm:$0xff] }
  0x5c   :  { %1668 = vmatprep.subr.bf16.mxu0 %v1667_v3  ;;  %v1675_v8 = vpack.c.bf16 %v119_v7, %v118_v6  ;;  %v121_v11 = vld [vmem:[#allocation5 + $0x38] sm:$0xff]  ;;  %1363 = vmatprep.mubr.f32.mxu0 %v2149_v9  ;;  %v122_v13 = vld [vmem:[#allocation5 + $0x40] sm:$0xff]  ;;  %v123_v14 = vld [vmem:[#allocation5 + $0x48] sm:$0xff] }
  0x5d   :  { %1670 = vmatpush3.bf16.msra.mxu0 %v1667_v3  ;;  %v1679_v12 = vpack.c.bf16 %v121_v11, %v120_v10  ;;  %v130_v15 = vld [vmem:[#allocation7] sm:$0xff]  ;;  %v131_v16 = vld [vmem:[#allocation7 + $0x8] sm:$0xff]  ;;  %v132_v17 = vld [vmem:[#allocation7 + $0x10] sm:$0xff]  ;;  %v1683_v21 = vpack.c.bf16 %v123_v14, %v122_v13 }
  0x5e   :  { %1672 = vmatprep.subr.bf16.mxu0 %v1671_v5  ;;  %v133_v18 = vld [vmem:[#allocation7 + $0x18] sm:$0xff]  ;;  %v1699_v19 = vpack.c.bf16 %v131_v16, %v130_v15  ;;  %v134_v22 = vld [vmem:[#allocation7 + $0x20] sm:$0xff]  ;;  %v135_v23 = vld [vmem:[#allocation7 + $0x28] sm:$0xff] }
  0x5f   :  { %v1703_v20 = vpack.c.bf16 %v133_v18, %v132_v17  ;;  %v124_v24 = vld [vmem:[#allocation5 + $0x50] sm:$0xff]  ;;  %v125_v25 = vld [vmem:[#allocation5 + $0x58] sm:$0xff]  ;;  %v1707_v26 = vpack.c.bf16 %v135_v23, %v134_v22  ;;  %v126_v30 = vld [vmem:[#allocation5 + $0x60] sm:$0xff] }
  0x60   :  { %1700 = vmatprep.subr.bf16.mxu1 %v1699_v19  ;;  %v1687_v27 = vpack.c.bf16 %v125_v25, %v124_v24  ;;  %v136_v28 = vld [vmem:[#allocation7 + $0x30] sm:$0xff]  ;;  %v137_v29 = vld [vmem:[#allocation7 + $0x38] sm:$0xff]  ;;  %v127_v31 = vld [vmem:[#allocation5 + $0x68] sm:$0xff] }
  0x61   :  { %1674 = vmatpush3.bf16.msra.mxu0 %v1671_v5  ;;  %1702 = vmatpush3.bf16.msra.mxu1 %v1699_v19  ;;  %v1711_v32 = vpack.c.bf16 %v137_v29, %v136_v28  ;;  %v1691_v33 = vpack.c.bf16 %v127_v31, %v126_v30  ;;  %v138_v34 = vld [vmem:[#allocation7 + $0x40] sm:$0xff]  ;;  %v139_v35 = vld [vmem:[#allocation7 + $0x48] sm:$0xff]  ;;  %v128_v36 = vld [vmem:[#allocation5 + $0x70] sm:$0xff] }
  0x62   :  { %1676 = vmatprep.subr.bf16.mxu0 %v1675_v8  ;;  %1704 = vmatprep.subr.bf16.mxu1 %v1703_v20  ;;  %v129_v37 = vld [vmem:[#allocation5 + $0x78] sm:$0xff]  ;;  %v1715_v38 = vpack.c.bf16 %v139_v35, %v138_v34  ;;  %v140_v40 = vld [vmem:[#allocation7 + $0x50] sm:$0xff]  ;;  %v142_v43 = vld [vmem:[#allocation7 + $0x60] sm:$0xff] }
  0x63   :  { %v1695_v39 = vpack.c.bf16 %v129_v37, %v128_v36  ;;  %v141_v41 = vld [vmem:[#allocation7 + $0x58] sm:$0xff]  ;;  %v143_v44 = vld [vmem:[#allocation7 + $0x68] sm:$0xff]  ;;  %v2154_v47 = vld [vmem:[#allocation2 + $0x10] sm:$0xff] }
  0x64   :  { %v1719_v42 = vpack.c.bf16 %v141_v41, %v140_v40  ;;  %v2152_v45 = vld [vmem:[#allocation2 + $0x8] sm:$0xff]  ;;  %v1723_v46 = vpack.c.bf16 %v143_v44, %v142_v43  ;;  %v144_v48 = vld [vmem:[#allocation7 + $0x70] sm:$0xff]  ;;  %v145_v49 = vld [vmem:[#allocation7 + $0x78] sm:$0xff] }
  0x65   :  { %1678 = vmatpush3.bf16.msra.mxu0 %v1675_v8  ;;  %1706 = vmatpush3.bf16.msra.mxu1 %v1703_v20  ;;  %v2158_v50 = vld [vmem:[#allocation2 + $0x18] sm:$0xff]  ;;  %v1727_v51 = vpack.c.bf16 %v145_v49, %v144_v48  ;;  %v2160_v52 = vld [vmem:[#allocation2 + $0x20] sm:$0xff]  ;;  %v2164_v53 = vld [vmem:[#allocation2 + $0x28] sm:$0xff] }
  0x66   :  { %1680 = vmatprep.subr.bf16.mxu0 %v1679_v12  ;;  %1708 = vmatprep.subr.bf16.mxu1 %v1707_v26  ;;  %v2166_v54 = vld [vmem:[#allocation2 + $0x30] sm:$0xff]  ;;  %v2170_v55 = vld [vmem:[#allocation2 + $0x38] sm:$0xff]  ;;  %v2172_v56 = vld [vmem:[#allocation2 + $0x40] sm:$0xff] }
  0x67   :  { %v2176_v57 = vld [vmem:[#allocation2 + $0x48] sm:$0xff]  ;;  %v2178_v58 = vld [vmem:[#allocation2 + $0x50] sm:$0xff]  ;;  %v2182_v59 = vld [vmem:[#allocation2 + $0x58] sm:$0xff] }
  0x68   :  { %v2184_v60 = vld [vmem:[#allocation2 + $0x60] sm:$0xff]  ;;  %v2188_v61 = vld [vmem:[#allocation2 + $0x68] sm:$0xff]  ;;  %v2190_v62 = vld [vmem:[#allocation2 + $0x70] sm:$0xff] }
  0x69   :  { %1682 = vmatpush3.bf16.msra.mxu0 %v1679_v12  ;;  %1710 = vmatpush3.bf16.msra.mxu1 %v1707_v26  ;;  %v2194_v63 = vld [vmem:[#allocation2 + $0x78] sm:$0xff]  ;;  %v459_v17 = vld [vmem:[#allocation8] sm:$0xff]  ;;  %v460_v18 = vld [vmem:[#allocation8 + $0x8] sm:$0xff] }
  0x6a   :  { %1684 = vmatprep.subr.bf16.mxu0 %v1683_v21  ;;  %1712 = vmatprep.subr.bf16.mxu1 %v1711_v32  ;;  %v461_v19 = vld [vmem:[#allocation8 + $0x10] sm:$0xff]  ;;  %v1763_v20 = vpack.c.bf16 %v460_v18, %v459_v17  ;;  %v463_v23 = vld [vmem:[#allocation8 + $0x20] sm:$0xff]  ;;  %v464_v24 = vld [vmem:[#allocation8 + $0x28] sm:$0xff] }
  0x6b   :  { %v1771_v25 = vpack.c.bf16 %v464_v24, %v463_v23  ;;  %v465_v26 = vld [vmem:[#allocation8 + $0x30] sm:$0xff]  ;;  %v467_v29 = vld [vmem:[#allocation8 + $0x40] sm:$0xff]  ;;  %v468_v30 = vld [vmem:[#allocation8 + $0x48] sm:$0xff] }
  0x6c   :  { %v1779_v31 = vpack.c.bf16 %v468_v30, %v467_v29  ;;  %v471_v35 = vld [vmem:[#allocation8 + $0x60] sm:$0xff]  ;;  %v472_v36 = vld [vmem:[#allocation8 + $0x68] sm:$0xff] }
  0x6d   :  { %1686 = vmatpush3.bf16.msra.mxu0 %v1683_v21  ;;  %1714 = vmatpush3.bf16.msra.mxu1 %v1711_v32  ;;  %v462_v21 = vld [vmem:[#allocation8 + $0x18] sm:$0xff]  ;;  %v469_v32 = vld [vmem:[#allocation8 + $0x50] sm:$0xff]  ;;  %v1787_v37 = vpack.c.bf16 %v472_v36, %v471_v35  ;;  %v2201_v41 = vld [vmem:[%s2292_s3] ss:$0 sm:$0xff] }
  0x6e   :  { %1688 = vmatprep.subr.bf16.mxu0 %v1687_v27  ;;  %1716 = vmatprep.subr.bf16.mxu1 %v1715_v38  ;;  %v1767_v22 = vpack.c.bf16 %v462_v21, %v461_v19 }
  0x71   :  { %1690 = vmatpush3.bf16.msra.mxu0 %v1687_v27  ;;  %1718 = vmatpush3.bf16.msra.mxu1 %v1715_v38  ;;  %v466_v27 = vld [vmem:[#allocation8 + $0x38] sm:$0xff]  ;;  %v473_v38 = vld [vmem:[#allocation8 + $0x70] sm:$0xff] }
  0x72   :  { %1692 = vmatprep.subr.bf16.mxu0 %v1691_v33  ;;  %1720 = vmatprep.subr.bf16.mxu1 %v1719_v42  ;;  %v1775_v28 = vpack.c.bf16 %v466_v27, %v465_v26 }
  0x75   :  { %1694 = vmatpush3.bf16.msra.mxu0 %v1691_v33  ;;  %1722 = vmatpush3.bf16.msra.mxu1 %v1719_v42  ;;  %v470_v33 = vld [vmem:[#allocation8 + $0x58] sm:$0xff] }
  0x76   :  { %1696 = vmatprep.subr.bf16.mxu0 %v1695_v39  ;;  %1724 = vmatprep.subr.bf16.mxu1 %v1723_v46  ;;  %v1783_v34 = vpack.c.bf16 %v470_v33, %v469_v32 }
  0x79   :  { %1698 = vmatpush3.bf16.msra.mxu0 %v1695_v39  ;;  %1726 = vmatpush3.bf16.msra.mxu1 %v1723_v46  ;;  %v474_v39 = vld [vmem:[#allocation8 + $0x78] sm:$0xff] }
  0x7a   :  { %1728 = vmatprep.subr.bf16.mxu1 %v1727_v51  ;;  %v1791_v40 = vpack.c.bf16 %v474_v39, %v473_v38 }
  0x7c   :  { %1364 = vmatmul.mubr.f32.vlgmr.msra.gmra.mrb[0].mxu0 %v2152_v45 }
  0x7d   :  { %1366 = vmatprep.mubr.f32.mxu0 %v2154_v47  ;;  %1730 = vmatpush3.bf16.msra.mxu1 %v1727_v51 }
  0x7e   :  { %1764 = vmatprep.subr.bf16.mxu1 %v1763_v20 }
  0x80   :  { %1367 = vmatmul.mubr.f32.gmra.mrb[2].mxu0 %v2158_v50 }
  0x81   :  { %1369 = vmatprep.mubr.f32.mxu0 %v2160_v52 }
  0x84   :  { %1370 = vmatmul.mubr.f32.gmra.mrb[4].mxu0 %v2164_v53 }
  0x85   :  { %1372 = vmatprep.mubr.f32.mxu0 %v2166_v54 }
  0x88   :  { %1373 = vmatmul.mubr.f32.gmra.mrb[6].mxu0 %v2170_v55 }
  0x89   :  { %1375 = vmatprep.mubr.f32.mxu0 %v2172_v56 }
  0x8c   :  { %1376 = vmatmul.mubr.f32.gmra.mrb[8].mxu0 %v2176_v57 }
  0x8d   :  { %1378 = vmatprep.mubr.f32.mxu0 %v2178_v58 }
  0x90   :  { %1379 = vmatmul.mubr.f32.gmra.mrb[10].mxu0 %v2182_v59 }
  0x91   :  { %1381 = vmatprep.mubr.f32.mxu0 %v2184_v60 }
  0x94   :  { %1382 = vmatmul.mubr.f32.gmra.mrb[12].mxu0 %v2188_v61 }
  0x95   :  { %1384 = vmatprep.mubr.f32.mxu0 %v2190_v62 }
  0x98   :  { %1385 = vmatmul.mubr.f32.gmra.mrb[14].mxu0 %v2194_v63 }
  0x99   :  { %1475 = vmatprep.mubr.f32.mxu0 %v2149_v9 }
 0x14f   :  { %v1365_v0 = vpop.f32.mrb[0].mxu0 }
 0x150   :  { %v213_v1 = vpop.f32.mrb[1].mxu0 }
 0x151   :  { %1419 = vmatprep.mubr.f32.mxu1 %v213_v1 }
 0x152   :  { %1420 = vmatmul.mubr.f32.vlgmr.msra.gmra.mrb[0].mxu1 %v1365_v0 }
 0x153   :  { %v1368_v2 = vpop.f32.mrb[2].mxu0  ;;  %1766 = vmatpush3.bf16.msra.mxu1 %v1763_v20 }
 0x154   :  { %v223_v3 = vpop.f32.mrb[3].mxu0  ;;  %1768 = vmatprep.subr.bf16.mxu1 %v1767_v22 }
 0x155   :  { %1422 = vmatprep.mubr.f32.mxu1 %v223_v3 }
 0x156   :  { %1423 = vmatmul.mubr.f32.gmra.mrb[2].mxu1 %v1368_v2 }
 0x157   :  { %v1371_v4 = vpop.f32.mrb[4].mxu0  ;;  %1770 = vmatpush3.bf16.msra.mxu1 %v1767_v22 }
 0x158   :  { %v233_v5 = vpop.f32.mrb[5].mxu0  ;;  %1772 = vmatprep.subr.bf16.mxu1 %v1771_v25 }
 0x159   :  { %1425 = vmatprep.mubr.f32.mxu1 %v233_v5 }
 0x15a   :  { %1426 = vmatmul.mubr.f32.gmra.mrb[4].mxu1 %v1371_v4 }
 0x15b   :  { %v1374_v6 = vpop.f32.mrb[6].mxu0  ;;  %1774 = vmatpush3.bf16.msra.mxu1 %v1771_v25 }
 0x15c   :  { %v243_v7 = vpop.f32.mrb[7].mxu0  ;;  %1776 = vmatprep.subr.bf16.mxu1 %v1775_v28 }
 0x15d   :  { %1428 = vmatprep.mubr.f32.mxu1 %v243_v7 }
 0x15e   :  { %1429 = vmatmul.mubr.f32.gmra.mrb[6].mxu1 %v1374_v6 }
 0x15f   :  { %v1377_v8 = vpop.f32.mrb[8].mxu0  ;;  %1778 = vmatpush3.bf16.msra.mxu1 %v1775_v28 }
 0x160   :  { %v253_v10 = vpop.f32.mrb[9].mxu0  ;;  %1780 = vmatprep.subr.bf16.mxu1 %v1779_v31 }
 0x161   :  { %1431 = vmatprep.mubr.f32.mxu1 %v253_v10 }
 0x162   :  { %1432 = vmatmul.mubr.f32.gmra.mrb[8].mxu1 %v1377_v8 }
 0x163   :  { %v1380_v11 = vpop.f32.mrb[10].mxu0  ;;  %1782 = vmatpush3.bf16.msra.mxu1 %v1779_v31 }
 0x164   :  { %v263_v12 = vpop.f32.mrb[11].mxu0  ;;  %1784 = vmatprep.subr.bf16.mxu1 %v1783_v34 }
 0x165   :  { %1434 = vmatprep.mubr.f32.mxu1 %v263_v12 }
 0x166   :  { %1435 = vmatmul.mubr.f32.gmra.mrb[10].mxu1 %v1380_v11 }
 0x167   :  { %v1383_v13 = vpop.f32.mrb[12].mxu0  ;;  %1786 = vmatpush3.bf16.msra.mxu1 %v1783_v34 }
 0x168   :  { %v273_v14 = vpop.f32.mrb[13].mxu0  ;;  %1788 = vmatprep.subr.bf16.mxu1 %v1787_v37 }
 0x169   :  { %1437 = vmatprep.mubr.f32.mxu1 %v273_v14 }
 0x16a   :  { %1438 = vmatmul.mubr.f32.gmra.mrb[12].mxu1 %v1383_v13 }
 0x16b   :  { %v1386_v15 = vpop.f32.mrb[14].mxu0  ;;  %1790 = vmatpush3.bf16.msra.mxu1 %v1787_v37 }
 0x16c   :  { %v283_v16 = vpop.f32.mrb[15].mxu0  ;;  %1792 = vmatprep.subr.bf16.mxu1 %v1791_v40 }
 0x16d   :  { %1440 = vmatprep.mubr.f32.mxu1 %v283_v16 }
 0x16e   :  { %1441 = vmatmul.mubr.f32.gmra.mrb[14].mxu1 %v1386_v15 }
 0x16f   :  { %1794 = vmatpush3.bf16.msra.mxu1 %v1791_v40 }
 0x225   :  { %v1421_v42 = vpop.f32.mrb[0].mxu1 }
 0x226   :  { %v370_v43 = vadd.f32 %v1421_v42, %v2201_v41  ;;  %v364_v44 = vpop.f32.mrb[1].mxu1 }
 0x227   :  { %v365_v46 = vadd.f32 %v2201_v41, %v364_v44 }
 0x228   :  { %v444_v48 = vmax.f32 %v370_v43, 0.0 }
 0x229   :  { %v443_v49 = vmax.f32 %v365_v46, 0.0  ;;  %v1424_v51 = vpop.f32.mrb[2].mxu1 }
 0x22a   :  { %v380_v0 = vadd.f32 %v1424_v51, %v2201_v41  ;;  %v374_v1 = vpop.f32.mrb[3].mxu1 }
 0x22b   :  { %v1731_v2 = vpack.c.bf16 %v444_v48, %v443_v49  ;;  %v375_v3 = vadd.f32 %v2201_v41, %v374_v1 }
 0x22c   :  { %v446_v4 = vmax.f32 %v380_v0, 0.0 }
 0x22d   :  { %v445_v5 = vmax.f32 %v375_v3, 0.0  ;;  %v1427_v6 = vpop.f32.mrb[4].mxu1  ;;  %1732 = vmatprep.subr.bf16.mxu0 %v1731_v2 }
 0x22e   :  { %v390_v7 = vadd.f32 %v1427_v6, %v2201_v41  ;;  %v384_v8 = vpop.f32.mrb[5].mxu1  ;;  %1734 = vmatpush3.bf16.msra.mxu0 %v1731_v2 }
 0x22f   :  { %v1735_v10 = vpack.c.bf16 %v446_v4, %v445_v5  ;;  %v385_v11 = vadd.f32 %v2201_v41, %v384_v8 }
 0x230   :  { %v448_v12 = vmax.f32 %v390_v7, 0.0 }
 0x231   :  { %v447_v13 = vmax.f32 %v385_v11, 0.0  ;;  %v1430_v14 = vpop.f32.mrb[6].mxu1  ;;  %1736 = vmatprep.subr.bf16.mxu0 %v1735_v10 }
 0x232   :  { %v400_v15 = vadd.f32 %v1430_v14, %v2201_v41  ;;  %v394_v16 = vpop.f32.mrb[7].mxu1  ;;  %1738 = vmatpush3.bf16.msra.mxu0 %v1735_v10 }
 0x233   :  { %v1739_v17 = vpack.c.bf16 %v448_v12, %v447_v13  ;;  %v395_v18 = vadd.f32 %v2201_v41, %v394_v16 }
 0x234   :  { %v450_v19 = vmax.f32 %v400_v15, 0.0 }
 0x235   :  { %v449_v20 = vmax.f32 %v395_v18, 0.0  ;;  %v1433_v21 = vpop.f32.mrb[8].mxu1  ;;  %1740 = vmatprep.subr.bf16.mxu0 %v1739_v17  ;;  %v789_v18 = vld [vmem:[#allocation10 + $0x8] sm:$0xff] }
 0x236   :  { %v410_v22 = vadd.f32 %v1433_v21, %v2201_v41  ;;  %v404_v23 = vpop.f32.mrb[9].mxu1  ;;  %1742 = vmatpush3.bf16.msra.mxu0 %v1739_v17  ;;  %v788_v17 = vld [vmem:[#allocation10] sm:$0xff]  ;;  %v791_v21 = vld [vmem:[#allocation10 + $0x18] sm:$0xff] }
 0x237   :  { %v1743_v24 = vpack.c.bf16 %v450_v19, %v449_v20  ;;  %v405_v25 = vadd.f32 %v2201_v41, %v404_v23  ;;  %v790_v19 = vld [vmem:[#allocation10 + $0x10] sm:$0xff]  ;;  %v1827_v20 = vpack.c.bf16 %v789_v18, %v788_v17  ;;  %v792_v23 = vld [vmem:[#allocation10 + $0x20] sm:$0xff] }
 0x238   :  { %v452_v26 = vmax.f32 %v410_v22, 0.0  ;;  %v1831_v22 = vpack.c.bf16 %v791_v21, %v790_v19 }
 0x239   :  { %v451_v27 = vmax.f32 %v405_v25, 0.0  ;;  %v1436_v28 = vpop.f32.mrb[10].mxu1  ;;  %1744 = vmatprep.subr.bf16.mxu0 %v1743_v24  ;;  %1828 = vmatprep.subr.bf16.mxu1 %v1827_v20 }
 0x23a   :  { %v420_v29 = vadd.f32 %v1436_v28, %v2201_v41  ;;  %v414_v30 = vpop.f32.mrb[11].mxu1  ;;  %1746 = vmatpush3.bf16.msra.mxu0 %v1743_v24  ;;  %v793_v24 = vld [vmem:[#allocation10 + $0x28] sm:$0xff] }
 0x23b   :  { %v1747_v31 = vpack.c.bf16 %v452_v26, %v451_v27  ;;  %v415_v32 = vadd.f32 %v2201_v41, %v414_v30  ;;  %v1835_v25 = vpack.c.bf16 %v793_v24, %v792_v23  ;;  %v794_v26 = vld [vmem:[#allocation10 + $0x30] sm:$0xff]  ;;  %v795_v27 = vld [vmem:[#allocation10 + $0x38] sm:$0xff]  ;;  %v797_v30 = vld [vmem:[#allocation10 + $0x48] sm:$0xff] }
 0x23c   :  { %v454_v33 = vmax.f32 %v420_v29, 0.0  ;;  %v1839_v28 = vpack.c.bf16 %v795_v27, %v794_v26  ;;  %v796_v29 = vld [vmem:[#allocation10 + $0x40] sm:$0xff] }
 0x23d   :  { %v453_v34 = vmax.f32 %v415_v32, 0.0  ;;  %v1439_v35 = vpop.f32.mrb[12].mxu1  ;;  %1748 = vmatprep.subr.bf16.mxu0 %v1747_v31  ;;  %v798_v32 = vld [vmem:[#allocation10 + $0x50] sm:$0xff] }
 0x23e   :  { %v430_v36 = vadd.f32 %v1439_v35, %v2201_v41  ;;  %v424_v37 = vpop.f32.mrb[13].mxu1  ;;  %1750 = vmatpush3.bf16.msra.mxu0 %v1747_v31  ;;  %v1843_v31 = vpack.c.bf16 %v797_v30, %v796_v29  ;;  %v800_v35 = vld [vmem:[#allocation10 + $0x60] sm:$0xff] }
 0x23f   :  { %v1751_v38 = vpack.c.bf16 %v454_v33, %v453_v34  ;;  %v425_v39 = vadd.f32 %v2201_v41, %v424_v37  ;;  %v799_v33 = vld [vmem:[#allocation10 + $0x58] sm:$0xff] }
 0x240   :  { %v456_v40 = vmax.f32 %v430_v36, 0.0  ;;  %v1847_v34 = vpack.c.bf16 %v799_v33, %v798_v32  ;;  %v801_v36 = vld [vmem:[#allocation10 + $0x68] sm:$0xff] }
 0x241   :  { %v455_v42 = vmax.f32 %v425_v39, 0.0  ;;  %v1442_v43 = vpop.f32.mrb[14].mxu1  ;;  %1752 = vmatprep.subr.bf16.mxu0 %v1751_v38  ;;  %v1851_v37 = vpack.c.bf16 %v801_v36, %v800_v35  ;;  %v803_v39 = vld [vmem:[#allocation10 + $0x78] sm:$0xff] }
 0x242   :  { %v440_v44 = vadd.f32 %v1442_v43, %v2201_v41  ;;  %v434_v46 = vpop.f32.mrb[15].mxu1  ;;  %1754 = vmatpush3.bf16.msra.mxu0 %v1751_v38  ;;  %v802_v38 = vld [vmem:[#allocation10 + $0x70] sm:$0xff] }
 0x243   :  { %v1755_v48 = vpack.c.bf16 %v456_v40, %v455_v42  ;;  %v435_v49 = vadd.f32 %v2201_v41, %v434_v46  ;;  %v1855_v40 = vpack.c.bf16 %v803_v39, %v802_v38  ;;  %v2238_v42 = vld [vmem:[%s2294_s5] ss:$0 sm:$0xff] }
 0x244   :  { %v458_v51 = vmax.f32 %v440_v44, 0.0 }
 0x245   :  { %v457_v0 = vmax.f32 %v435_v49, 0.0  ;;  %1756 = vmatprep.subr.bf16.mxu0 %v1755_v48 }
 0x246   :  { %1758 = vmatpush3.bf16.msra.mxu0 %v1755_v48 }
 0x247   :  { %v1759_v1 = vpack.c.bf16 %v458_v51, %v457_v0 }
 0x249   :  { %1760 = vmatprep.subr.bf16.mxu0 %v1759_v1 }
 0x24a   :  { %1762 = vmatpush3.bf16.msra.mxu0 %v1759_v1 }
 0x24d   :  { %1476 = vmatmul.mubr.f32.vlgmr.msra.gmra.mrb[16].mxu0 %v2152_v45 }
 0x24e   :  { %1478 = vmatprep.mubr.f32.mxu0 %v2154_v47 }
 0x251   :  { %1479 = vmatmul.mubr.f32.gmra.mrb[18].mxu0 %v2158_v50 }
 0x252   :  { %1481 = vmatprep.mubr.f32.mxu0 %v2160_v52 }
 0x255   :  { %1482 = vmatmul.mubr.f32.gmra.mrb[20].mxu0 %v2164_v53 }
 0x256   :  { %1484 = vmatprep.mubr.f32.mxu0 %v2166_v54 }
 0x259   :  { %1485 = vmatmul.mubr.f32.gmra.mrb[22].mxu0 %v2170_v55 }
 0x25a   :  { %1487 = vmatprep.mubr.f32.mxu0 %v2172_v56 }
 0x25d   :  { %1488 = vmatmul.mubr.f32.gmra.mrb[24].mxu0 %v2176_v57 }
 0x25e   :  { %1490 = vmatprep.mubr.f32.mxu0 %v2178_v58 }
 0x261   :  { %1491 = vmatmul.mubr.f32.gmra.mrb[26].mxu0 %v2182_v59 }
 0x262   :  { %1493 = vmatprep.mubr.f32.mxu0 %v2184_v60 }
 0x265   :  { %1494 = vmatmul.mubr.f32.gmra.mrb[28].mxu0 %v2188_v61 }
 0x266   :  { %1496 = vmatprep.mubr.f32.mxu0 %v2190_v62 }
 0x269   :  { %1497 = vmatmul.mubr.f32.gmra.mrb[30].mxu0 %v2194_v63 }
 0x26a   :  { %1587 = vmatprep.mubr.f32.mxu0 %v2149_v9 }
 0x320   :  { %v1477_v41 = vpop.f32.mrb[16].mxu0 }
 0x321   :  { %v542_v2 = vpop.f32.mrb[17].mxu0 }
 0x322   :  { %1531 = vmatprep.mubr.f32.mxu1 %v542_v2 }
 0x323   :  { %1532 = vmatmul.mubr.f32.vlgmr.msra.gmra.mrb[16].mxu1 %v1477_v41 }
 0x324   :  { %v1480_v3 = vpop.f32.mrb[18].mxu0  ;;  %1830 = vmatpush3.bf16.msra.mxu1 %v1827_v20 }
 0x325   :  { %v552_v4 = vpop.f32.mrb[19].mxu0  ;;  %1832 = vmatprep.subr.bf16.mxu1 %v1831_v22 }
 0x326   :  { %1534 = vmatprep.mubr.f32.mxu1 %v552_v4 }
 0x327   :  { %1535 = vmatmul.mubr.f32.gmra.mrb[18].mxu1 %v1480_v3 }
 0x328   :  { %v1483_v5 = vpop.f32.mrb[20].mxu0  ;;  %1834 = vmatpush3.bf16.msra.mxu1 %v1831_v22 }
 0x329   :  { %v562_v6 = vpop.f32.mrb[21].mxu0  ;;  %1836 = vmatprep.subr.bf16.mxu1 %v1835_v25 }
 0x32a   :  { %1537 = vmatprep.mubr.f32.mxu1 %v562_v6 }
 0x32b   :  { %1538 = vmatmul.mubr.f32.gmra.mrb[20].mxu1 %v1483_v5 }
 0x32c   :  { %v1486_v7 = vpop.f32.mrb[22].mxu0  ;;  %1838 = vmatpush3.bf16.msra.mxu1 %v1835_v25 }
 0x32d   :  { %v572_v8 = vpop.f32.mrb[23].mxu0  ;;  %1840 = vmatprep.subr.bf16.mxu1 %v1839_v28 }
 0x32e   :  { %1540 = vmatprep.mubr.f32.mxu1 %v572_v8 }
 0x32f   :  { %1541 = vmatmul.mubr.f32.gmra.mrb[22].mxu1 %v1486_v7 }
 0x330   :  { %v1489_v10 = vpop.f32.mrb[24].mxu0  ;;  %1842 = vmatpush3.bf16.msra.mxu1 %v1839_v28 }
 0x331   :  { %v582_v11 = vpop.f32.mrb[25].mxu0  ;;  %1844 = vmatprep.subr.bf16.mxu1 %v1843_v31 }
 0x332   :  { %1543 = vmatprep.mubr.f32.mxu1 %v582_v11 }
 0x333   :  { %1544 = vmatmul.mubr.f32.gmra.mrb[24].mxu1 %v1489_v10 }
 0x334   :  { %v1492_v9 = vpop.f32.mrb[26].mxu0  ;;  %1846 = vmatpush3.bf16.msra.mxu1 %v1843_v31 }
 0x335   :  { %v592_v12 = vpop.f32.mrb[27].mxu0  ;;  %1848 = vmatprep.subr.bf16.mxu1 %v1847_v34 }
 0x336   :  { %1546 = vmatprep.mubr.f32.mxu1 %v592_v12 }
 0x337   :  { %1547 = vmatmul.mubr.f32.gmra.mrb[26].mxu1 %v1492_v9 }
 0x338   :  { %v1495_v13 = vpop.f32.mrb[28].mxu0  ;;  %1850 = vmatpush3.bf16.msra.mxu1 %v1847_v34 }
 0x339   :  { %v602_v14 = vpop.f32.mrb[29].mxu0  ;;  %1852 = vmatprep.subr.bf16.mxu1 %v1851_v37 }
 0x33a   :  { %1549 = vmatprep.mubr.f32.mxu1 %v602_v14 }
 0x33b   :  { %1550 = vmatmul.mubr.f32.gmra.mrb[28].mxu1 %v1495_v13 }
 0x33c   :  { %v1498_v15 = vpop.f32.mrb[30].mxu0  ;;  %1854 = vmatpush3.bf16.msra.mxu1 %v1851_v37 }
 0x33d   :  { %v612_v16 = vpop.f32.mrb[31].mxu0  ;;  %1856 = vmatprep.subr.bf16.mxu1 %v1855_v40 }
 0x33e   :  { %1552 = vmatprep.mubr.f32.mxu1 %v612_v16 }
 0x33f   :  { %1553 = vmatmul.mubr.f32.gmra.mrb[30].mxu1 %v1498_v15 }
 0x340   :  { %1858 = vmatpush3.bf16.msra.mxu1 %v1855_v40 }
 0x3f6   :  { %v1533_v43 = vpop.f32.mrb[16].mxu1 }
 0x3f7   :  { %v699_v44 = vadd.f32 %v1533_v43, %v2238_v42  ;;  %v693_v46 = vpop.f32.mrb[17].mxu1 }
 0x3f8   :  { %v694_v48 = vadd.f32 %v2238_v42, %v693_v46 }
 0x3f9   :  { %v773_v49 = vmax.f32 %v699_v44, 0.0 }
 0x3fa   :  { %v772_v51 = vmax.f32 %v694_v48, 0.0  ;;  %v1536_v0 = vpop.f32.mrb[18].mxu1 }
 0x3fb   :  { %v709_v1 = vadd.f32 %v1536_v0, %v2238_v42  ;;  %v703_v41 = vpop.f32.mrb[19].mxu1 }
 0x3fc   :  { %v1795_v2 = vpack.c.bf16 %v773_v49, %v772_v51  ;;  %v704_v3 = vadd.f32 %v2238_v42, %v703_v41  ;;  %v1138_v41 = vld [vmem:[%s2296_s7] ss:$0 sm:$0xff]  ;;  %s2014_s7 = smov [#allocation11]  }
 0x3fd   :  { %v775_v4 = vmax.f32 %v709_v1, 0.0  ;;  %s1122_s24 = sshll.u32 %s2014_s7, 4  ;;  %s1123_s24 = int_to_ptr.vmem [resolvable:$true] %s1122_s24 }
 0x3fe   :  { %v774_v5 = vmax.f32 %v704_v3, 0.0  ;;  %v1539_v6 = vpop.f32.mrb[20].mxu1  ;;  %1796 = vmatprep.subr.bf16.mxu0 %v1795_v2  ;;  %s1977_s25 = scalar_lea.vmem %s1123_s24, 2048  ;;  %p1982_p13 = scmp.lt.s32.totalorder %s1123_s24, %s1123_s24 }
 0x3ff   :  { %v719_v7 = vadd.f32 %v1539_v6, %v2238_v42  ;;  %v713_v8 = vpop.f32.mrb[21].mxu1  ;;  %1798 = vmatpush3.bf16.msra.mxu0 %v1795_v2  ;;  %p1978_p12 = scmp.ne.s32.totalorder %s1123_s24, %s1977_s25  ;;  %p1983_p0 = scmp.lt.s32.totalorder %s1977_s25, %s1977_s25 }
 0x400   :  { %v1799_v10 = vpack.c.bf16 %v775_v4, %v774_v5  ;;  %v714_v11 = vadd.f32 %v2238_v42, %v713_v8 }
 0x401   :  { %v777_v9 = vmax.f32 %v719_v7, 0.0  ;;  %p1984_p1 = por %p1983_p0, %p1982_p13 }
 0x402   :  { %v776_v12 = vmax.f32 %v714_v11, 0.0  ;;  %v1542_v13 = vpop.f32.mrb[22].mxu1  ;;  %1800 = vmatprep.subr.bf16.mxu0 %v1799_v10 }
 0x403   :  { %v729_v14 = vadd.f32 %v1542_v13, %v2238_v42  ;;  %v723_v15 = vpop.f32.mrb[23].mxu1  ;;  %1802 = vmatpush3.bf16.msra.mxu0 %v1799_v10  ;;  %p1985_p2 = pnand %p1984_p1, %p1978_p12 }
 0x404   :  { %v1803_v16 = vpack.c.bf16 %v777_v9, %v776_v12  ;;  %v724_v17 = vadd.f32 %v2238_v42, %v723_v15 }
 0x405   :  { %v779_v18 = vmax.f32 %v729_v14, 0.0 }
 0x406   :  { %v778_v19 = vmax.f32 %v724_v17, 0.0  ;;  %v1545_v20 = vpop.f32.mrb[24].mxu1  ;;  %1804 = vmatprep.subr.bf16.mxu0 %v1803_v16 }
 0x407   :  { %v739_v21 = vadd.f32 %v1545_v20, %v2238_v42  ;;  %v733_v22 = vpop.f32.mrb[25].mxu1  ;;  %1806 = vmatpush3.bf16.msra.mxu0 %v1803_v16 }
 0x408   :  { %v1807_v23 = vpack.c.bf16 %v779_v18, %v778_v19  ;;  %v734_v24 = vadd.f32 %v2238_v42, %v733_v22 }
 0x409   :  { %v781_v25 = vmax.f32 %v739_v21, 0.0 }
 0x40a   :  { %v780_v26 = vmax.f32 %v734_v24, 0.0  ;;  %v1548_v27 = vpop.f32.mrb[26].mxu1  ;;  %1808 = vmatprep.subr.bf16.mxu0 %v1807_v23 }
 0x40b   :  { %v749_v28 = vadd.f32 %v1548_v27, %v2238_v42  ;;  %v743_v29 = vpop.f32.mrb[27].mxu1  ;;  %1810 = vmatpush3.bf16.msra.mxu0 %v1807_v23 }
 0x40c   :  { %v1811_v30 = vpack.c.bf16 %v781_v25, %v780_v26  ;;  %v744_v31 = vadd.f32 %v2238_v42, %v743_v29 }
 0x40d   :  { %v783_v32 = vmax.f32 %v749_v28, 0.0 }
 0x40e   :  { %v782_v33 = vmax.f32 %v744_v31, 0.0  ;;  %v1551_v34 = vpop.f32.mrb[28].mxu1  ;;  %1812 = vmatprep.subr.bf16.mxu0 %v1811_v30 }
 0x40f   :  { %v759_v35 = vadd.f32 %v1551_v34, %v2238_v42  ;;  %v753_v36 = vpop.f32.mrb[29].mxu1  ;;  %1814 = vmatpush3.bf16.msra.mxu0 %v1811_v30 }
 0x410   :  { %v1815_v37 = vpack.c.bf16 %v783_v32, %v782_v33  ;;  %v754_v38 = vadd.f32 %v2238_v42, %v753_v36 }
 0x411   :  { %v785_v39 = vmax.f32 %v759_v35, 0.0 }
 0x412   :  { %v784_v40 = vmax.f32 %v754_v38, 0.0  ;;  %v1554_v43 = vpop.f32.mrb[30].mxu1  ;;  %1816 = vmatprep.subr.bf16.mxu0 %v1815_v37 }
 0x413   :  { %v769_v44 = vadd.f32 %v1554_v43, %v2238_v42  ;;  %v763_v46 = vpop.f32.mrb[31].mxu1  ;;  %1818 = vmatpush3.bf16.msra.mxu0 %v1815_v37 }
 0x414   :  { %v1819_v48 = vpack.c.bf16 %v785_v39, %v784_v40  ;;  %v764_v49 = vadd.f32 %v2238_v42, %v763_v46 }
 0x415   :  { %v787_v51 = vmax.f32 %v769_v44, 0.0 }
 0x416   :  { %v786_v0 = vmax.f32 %v764_v49, 0.0  ;;  %1820 = vmatprep.subr.bf16.mxu0 %v1819_v48 }
 0x417   :  { %1822 = vmatpush3.bf16.msra.mxu0 %v1819_v48 }
 0x418   :  { %v1823_v1 = vpack.c.bf16 %v787_v51, %v786_v0 }
 0x41a   :  { %1824 = vmatprep.subr.bf16.mxu0 %v1823_v1 }
 0x41b   :  { %1826 = vmatpush3.bf16.msra.mxu0 %v1823_v1 }
 0x41e   :  { %1588 = vmatmul.mubr.f32.vlgmr.msra.gmra.mrb[32].mxu0 %v2152_v45 }
 0x41f   :  { %1590 = vmatprep.mubr.f32.mxu0 %v2154_v47 }
 0x422   :  { %1591 = vmatmul.mubr.f32.gmra.mrb[34].mxu0 %v2158_v50 }
 0x423   :  { %1593 = vmatprep.mubr.f32.mxu0 %v2160_v52 }
 0x426   :  { %1594 = vmatmul.mubr.f32.gmra.mrb[36].mxu0 %v2164_v53 }
 0x427   :  { %1596 = vmatprep.mubr.f32.mxu0 %v2166_v54 }
 0x42a   :  { %1597 = vmatmul.mubr.f32.gmra.mrb[38].mxu0 %v2170_v55 }
 0x42b   :  { %1599 = vmatprep.mubr.f32.mxu0 %v2172_v56 }
 0x42e   :  { %1600 = vmatmul.mubr.f32.gmra.mrb[40].mxu0 %v2176_v57 }
 0x42f   :  { %1602 = vmatprep.mubr.f32.mxu0 %v2178_v58 }
 0x432   :  { %1603 = vmatmul.mubr.f32.gmra.mrb[42].mxu0 %v2182_v59 }
 0x433   :  { %1605 = vmatprep.mubr.f32.mxu0 %v2184_v60 }
 0x436   :  { %1606 = vmatmul.mubr.f32.gmra.mrb[44].mxu0 %v2188_v61 }
 0x437   :  { %1608 = vmatprep.mubr.f32.mxu0 %v2190_v62 }
 0x43a   :  { %1609 = vmatmul.mubr.f32.gmra.mrb[46].mxu0 %v2194_v63 }
 0x4f1   :  { %v1589_v45 = vpop.f32.mrb[32].mxu0 }
 0x4f2   :  { %v871_v47 = vpop.f32.mrb[33].mxu0 }
 0x4f3   :  { %1643 = vmatprep.mubr.f32.mxu1 %v871_v47 }
 0x4f4   :  { %1644 = vmatmul.mubr.f32.vlgmr.msra.gmra.mrb[32].mxu1 %v1589_v45 }
 0x4f5   :  { %v1592_v50 = vpop.f32.mrb[34].mxu0 }
 0x4f6   :  { %v881_v52 = vpop.f32.mrb[35].mxu0 }
 0x4f7   :  { %1646 = vmatprep.mubr.f32.mxu1 %v881_v52 }
 0x4f8   :  { %1647 = vmatmul.mubr.f32.gmra.mrb[34].mxu1 %v1592_v50 }
 0x4f9   :  { %v1595_v53 = vpop.f32.mrb[36].mxu0 }
 0x4fa   :  { %v891_v54 = vpop.f32.mrb[37].mxu0 }
 0x4fb   :  { %1649 = vmatprep.mubr.f32.mxu1 %v891_v54 }
 0x4fc   :  { %1650 = vmatmul.mubr.f32.gmra.mrb[36].mxu1 %v1595_v53 }
 0x4fd   :  { %v1598_v55 = vpop.f32.mrb[38].mxu0 }
 0x4fe   :  { %v901_v56 = vpop.f32.mrb[39].mxu0 }
 0x4ff   :  { %1652 = vmatprep.mubr.f32.mxu1 %v901_v56 }
 0x500   :  { %1653 = vmatmul.mubr.f32.gmra.mrb[38].mxu1 %v1598_v55 }
 0x501   :  { %v1601_v57 = vpop.f32.mrb[40].mxu0 }
 0x502   :  { %v911_v58 = vpop.f32.mrb[41].mxu0 }
 0x503   :  { %1655 = vmatprep.mubr.f32.mxu1 %v911_v58 }
 0x504   :  { %1656 = vmatmul.mubr.f32.gmra.mrb[40].mxu1 %v1601_v57 }
 0x505   :  { %v1604_v59 = vpop.f32.mrb[42].mxu0 }
 0x506   :  { %v921_v60 = vpop.f32.mrb[43].mxu0 }
 0x507   :  { %1658 = vmatprep.mubr.f32.mxu1 %v921_v60 }
 0x508   :  { %1659 = vmatmul.mubr.f32.gmra.mrb[42].mxu1 %v1604_v59 }
 0x509   :  { %v1607_v61 = vpop.f32.mrb[44].mxu0 }
 0x50a   :  { %v931_v62 = vpop.f32.mrb[45].mxu0 }
 0x50b   :  { %1661 = vmatprep.mubr.f32.mxu1 %v931_v62 }
 0x50c   :  { %1662 = vmatmul.mubr.f32.gmra.mrb[44].mxu1 %v1607_v61 }
 0x50d   :  { %v1610_v63 = vpop.f32.mrb[46].mxu0 }
 0x50e   :  { %v941_v42 = vpop.f32.mrb[47].mxu0 }
 0x50f   :  { %1664 = vmatprep.mubr.f32.mxu1 %v941_v42 }
 0x510   :  { %1665 = vmatmul.mubr.f32.gmra.mrb[46].mxu1 %v1610_v63 }
 0x5c7   :  { %v1645_v2 = vpop.f32.mrb[32].mxu1 }
 0x5c8   :  { %v1028_v3 = vadd.f32 %v1645_v2, %v1138_v41  ;;  %v1022_v4 = vpop.f32.mrb[33].mxu1 }
 0x5c9   :  { %v1023_v5 = vadd.f32 %v1138_v41, %v1022_v4 }
 0x5ca   :  { %1102 = vst [vmem:[#allocation11 + $0x8] sm:$0xff] %v1028_v3 }
 0x5cb   :  { %1101 = vst [vmem:[#allocation11] sm:$0xff] %v1023_v5  ;;  %v1648_v6 = vpop.f32.mrb[34].mxu1 }
 0x5cc   :  { %v1038_v7 = vadd.f32 %v1648_v6, %v1138_v41  ;;  %v1032_v8 = vpop.f32.mrb[35].mxu1 }
 0x5cd   :  { %v1033_v10 = vadd.f32 %v1138_v41, %v1032_v8 }
 0x5ce   :  { %1104 = vst [vmem:[#allocation11 + $0x18] sm:$0xff] %v1038_v7 }
 0x5cf   :  { %1103 = vst [vmem:[#allocation11 + $0x10] sm:$0xff] %v1033_v10  ;;  %v1651_v11 = vpop.f32.mrb[36].mxu1 }
 0x5d0   :  { %v1048_v9 = vadd.f32 %v1651_v11, %v1138_v41  ;;  %v1042_v12 = vpop.f32.mrb[37].mxu1 }
 0x5d1   :  { %v1043_v13 = vadd.f32 %v1138_v41, %v1042_v12 }
 0x5d2   :  { %1106 = vst [vmem:[#allocation11 + $0x28] sm:$0xff] %v1048_v9 }
 0x5d3   :  { %1105 = vst [vmem:[#allocation11 + $0x20] sm:$0xff] %v1043_v13  ;;  %v1654_v14 = vpop.f32.mrb[38].mxu1 }
 0x5d4   :  { %v1058_v15 = vadd.f32 %v1654_v14, %v1138_v41  ;;  %v1052_v16 = vpop.f32.mrb[39].mxu1 }
 0x5d5   :  { %v1053_v17 = vadd.f32 %v1138_v41, %v1052_v16 }
 0x5d6   :  { %1108 = vst [vmem:[#allocation11 + $0x38] sm:$0xff] %v1058_v15 }
 0x5d7   :  { %1107 = vst [vmem:[#allocation11 + $0x30] sm:$0xff] %v1053_v17  ;;  %v1657_v18 = vpop.f32.mrb[40].mxu1 }
 0x5d8   :  { %v1068_v19 = vadd.f32 %v1657_v18, %v1138_v41  ;;  %v1062_v20 = vpop.f32.mrb[41].mxu1 }
 0x5d9   :  { %v1063_v21 = vadd.f32 %v1138_v41, %v1062_v20 }
 0x5da   :  { %1110 = vst [vmem:[#allocation11 + $0x48] sm:$0xff] %v1068_v19 }
 0x5db   :  { %1109 = vst [vmem:[#allocation11 + $0x40] sm:$0xff] %v1063_v21  ;;  %v1660_v22 = vpop.f32.mrb[42].mxu1 }
 0x5dc   :  { %v1078_v23 = vadd.f32 %v1660_v22, %v1138_v41  ;;  %v1072_v24 = vpop.f32.mrb[43].mxu1 }
 0x5dd   :  { %v1073_v25 = vadd.f32 %v1138_v41, %v1072_v24 }
 0x5de   :  { %1112 = vst [vmem:[#allocation11 + $0x58] sm:$0xff] %v1078_v23 }
 0x5df   :  { %1111 = vst [vmem:[#allocation11 + $0x50] sm:$0xff] %v1073_v25  ;;  %v1663_v26 = vpop.f32.mrb[44].mxu1 }
 0x5e0   :  { %v1088_v27 = vadd.f32 %v1663_v26, %v1138_v41  ;;  %v1082_v28 = vpop.f32.mrb[45].mxu1 }
 0x5e1   :  { %v1083_v29 = vadd.f32 %v1138_v41, %v1082_v28 }
 0x5e2   :  { %1114 = vst [vmem:[#allocation11 + $0x68] sm:$0xff] %v1088_v27 }
 0x5e3   :  { %1113 = vst [vmem:[#allocation11 + $0x60] sm:$0xff] %v1083_v29  ;;  %v1666_v30 = vpop.f32.mrb[46].mxu1 }
 0x5e4   :  { %v1098_v31 = vadd.f32 %v1666_v30, %v1138_v41  ;;  %v1092_v32 = vpop.f32.mrb[47].mxu1 }
 0x5e5   :  { %v1093_v33 = vadd.f32 %v1138_v41, %v1092_v32 }
 0x5e6   :  { %1116 = vst [vmem:[#allocation11 + $0x78] sm:$0xff] %v1098_v31 }
 0x5e7   :  { %1115 = vst [vmem:[#allocation11 + $0x70] sm:$0xff] %v1093_v33 }
 0x5e8   :  { %1988 = shalt.err (!%p1985_p2)
}
 0x5e9   :  { %s1989_s29 = scalar_lea.hbm %s2297_s8, 2048 }
 0x5ea   :  { %p1990_p3 = scmp.ne.s32.totalorder %s2297_s8, %s1989_s29  ;;  %p1993_p4 = scmp.lt.u32.totalorder %s1989_s29, %s2297_s8 }
 0x5ec   :  { %p1995_p5 = pnand %p1993_p4, %p1990_p3 }
 0x5ee   :  { %1998 = shalt.err (!%p1995_p5)
}
 0x5ef   :  { %1128 = dma.vmem_to_hbm [thread:$0]  %s1123_s24, 2048, %s2297_s8, [#allocation4], %s2009_s17, %s2009_s17, %s2010_s18  }
 0x5f0   :  { %2005 = dma.done.wait [#allocation4], 2048  }
 0x5f1   :  { %2006 = vsyncadd [#allocation4], 4294965248 }
 0x5f2   :  { %1132 = vsyncpa [#allocation3], 1 }
 0x5f3   :  { %1133 = vsyncpa [#allocation6], 1 }
 0x5f4   :  { %1134 = vsyncpa [#allocation9], 1 }
 0x5f5   :  { %1135 = vsyncpa [#allocation4], 1 }

</bundles_post_ra>
